<compile_context>
chip_gen: v6e
topology: v6e:2x2x1
jax: 0.10.0
libtpu: 0.0.40
codegen_flags: <defaults>
</compile_context>

<pallas_src>
import functools

import jax
import jax.numpy as jnp
from jax.experimental import pallas as pl
from jax.experimental.pallas import tpu as pltpu

EPS = 1e-5
MOMENTUM = 0.9


# --------------------- Pass A: per-lane sum / sum-of-squares ---------------------

def _stats_kernel(x_ref, sum_ref, sq_ref, *, total_rows, block_rows):
    step = pl.program_id(0)

    @pl.when(step == 0)
    def _():
        sum_ref[...] = jnp.zeros_like(sum_ref)
        sq_ref[...] = jnp.zeros_like(sq_ref)

    x = x_ref[...].astype(jnp.float32)
    if total_rows % block_rows != 0:
        # Mask out-of-range tail rows (only traced when the grid is ragged).
        base = step * block_rows
        rid = jax.lax.broadcasted_iota(jnp.int32, x.shape, 0)
        x = jnp.where(base + rid < total_rows, x, 0.0)

    sum_ref[...] += jnp.sum(x, axis=0, keepdims=True)
    sq_ref[...] += jnp.sum(x * x, axis=0, keepdims=True)


# --------------------- Pass B: normalize + affine (elementwise) -------------------

def _normalize_kernel(x_ref, scale_ref, shift_ref, g_ref, b_ref, y_ref):
    x = x_ref[...].astype(jnp.float32)
    x_hat = x * scale_ref[...] + shift_ref[...]          # per-lane scale/shift
    y = g_ref[...] * x_hat + b_ref[...]                  # per-row gamma/beta
    y_ref[...] = y.astype(y_ref.dtype)


# ----------------------------------- wrapper --------------------------------------

def _pick_block_rows(n_rows, lane_width, itemsize, target_bytes=2 * 1024 * 1024):
    """Largest row block with ~target_bytes footprint, sublane-aligned."""
    row_bytes = max(1, lane_width * itemsize)
    max_rows = max(1, target_bytes // row_bytes)
    if n_rows <= max_rows:
        return n_rows                      # full extent: always a legal block
    align = 16 if itemsize == 2 else 8     # bf16 packs 16 sublanes per vreg
    return max(align, (max_rows // align) * align)


def batch_norm_forward(x, gamma, beta, moving_mean, moving_var):
    """Training-mode forward of the d2l-style BatchNorm.

    x: (N, C, H, W); gamma/beta/moving_mean/moving_var: (1, C, 1, 1).
    Returns (Y, new_moving_mean, new_moving_var); moving stats come back as
    (1, C, 1, W), exactly as torch broadcasting produces in the reference.
    """
    N, C, H, W = x.shape
    R = N * C               # rows of the lane-dense slab
    HW = H * W              # lane width
    M = N * C * H           # reduction count per W column

    x2 = x.reshape(R, HW)
    itemsize = jnp.dtype(x.dtype).itemsize
    vmem_limit = 32 * 1024 * 1024

    # ---- Pass A: accumulate per-(h,w)-lane sum and sumsq over (n,c) rows ----
    br_a = _pick_block_rows(R, HW, itemsize)
    ssum, ssq = pl.pallas_call(
        functools.partial(_stats_kernel, total_rows=R, block_rows=br_a),
        out_shape=(jax.ShapeDtypeStruct((1, HW), jnp.float32),
                   jax.ShapeDtypeStruct((1, HW), jnp.float32)),
        grid=(pl.cdiv(R, br_a),),
        in_specs=[pl.BlockSpec((br_a, HW), lambda i: (i, 0))],
        out_specs=(pl.BlockSpec((1, HW), lambda i: (0, 0)),
                   pl.BlockSpec((1, HW), lambda i: (0, 0))),
        compiler_params=pltpu.CompilerParams(
            dimension_semantics=("arbitrary",),
            vmem_limit_bytes=vmem_limit),
    )(x2)

    # ---- tiny finalization (plain JAX, O(H*W)): fold H lane-groups -> per-W stats
    sum_w = ssum.reshape(H, W).sum(axis=0)
    sq_w = ssq.reshape(H, W).sum(axis=0)
    mean_w = sum_w / M                                         # (W,)
    var_w = jnp.maximum(sq_w / M - mean_w * mean_w, 0.0)       # one-pass variance
    rstd_w = jax.lax.rsqrt(var_w + EPS)

    # per-lane affine (x_hat = x * scale + shift), lane l = h*W + w -> stat of w
    scale_l = jnp.tile(rstd_w, H).reshape(1, HW)
    shift_l = jnp.tile(-mean_w * rstd_w, H).reshape(1, HW)

    # per-row gamma/beta: row r = n*C + c -> channel c = r % C   (tiny (R,1) arrays)
    gamma_c = gamma.reshape(C).astype(jnp.float32)
    beta_c = beta.reshape(C).astype(jnp.float32)
    g_rows = jnp.tile(gamma_c, N).reshape(R, 1)
    b_rows = jnp.tile(beta_c, N).reshape(R, 1)

    # ---- Pass B: normalize + affine, lane-dense loads/stores ----
    br_b = _pick_block_rows(R, HW, max(itemsize, 4))
    y2 = pl.pallas_call(
        _normalize_kernel,
        out_shape=jax.ShapeDtypeStruct((R, HW), x.dtype),
        grid=(pl.cdiv(R, br_b),),
        in_specs=[pl.BlockSpec((br_b, HW), lambda i: (i, 0)),
                  pl.BlockSpec((1, HW), lambda i: (0, 0)),
                  pl.BlockSpec((1, HW), lambda i: (0, 0)),
                  pl.BlockSpec((br_b, 1), lambda i: (i, 0)),
                  pl.BlockSpec((br_b, 1), lambda i: (i, 0))],
        out_specs=pl.BlockSpec((br_b, HW), lambda i: (i, 0)),
        compiler_params=pltpu.CompilerParams(
            dimension_semantics=("parallel",),
            vmem_limit_bytes=vmem_limit),
    )(x2, scale_l, shift_l, g_rows, b_rows)

    y = y2.reshape(N, C, H, W)

    # moving-stat update: (1,C,1,1) broadcast with (1,1,1,W) -> (1,C,1,W)
    mean4 = mean_w.reshape(1, 1, 1, W)
    var4 = var_w.reshape(1, 1, 1, W)
    new_mm = MOMENTUM * moving_mean.astype(jnp.float32) + (1.0 - MOMENTUM) * mean4
    new_mv = MOMENTUM * moving_var.astype(jnp.float32) + (1.0 - MOMENTUM) * var4
    return y, new_mm, new_mv


# --------------------------------- reference -------------------------------------

def _reference(x, gamma, beta, moving_mean, moving_var):
    """Pure-JAX transcription of the PyTorch reference (training branch)."""
    xf = x.astype(jnp.float32)
    mean = jnp.mean(xf, axis=(0, 1, 2), keepdims=True)
    var = jnp.mean((xf - mean) ** 2, axis=(0, 1, 2), keepdims=True)
    x_hat = (xf - mean) / jnp.sqrt(var + EPS)
    y = gamma * x_hat + beta
    new_mm = MOMENTUM * moving_mean + (1.0 - MOMENTUM) * mean
    new_mv = MOMENTUM * moving_var + (1.0 - MOMENTUM) * var
    return y.astype(x.dtype), new_mm, new_mv


if __name__ == "__main__":
    N, C, H, W = 2, 4, 16, 16
    key = jax.random.PRNGKey(0)
    x = jax.random.normal(key, (N, C, H, W), dtype=jnp.float32)

    # Deterministic parameter init, matching BatchNorm.__init__(feats=C).
    gamma = jnp.ones((1, C, 1, 1), dtype=jnp.float32)
    beta = jnp.zeros((1, C, 1, 1), dtype=jnp.float32)
    moving_mean = jnp.zeros((1, C, 1, 1), dtype=jnp.float32)
    moving_var = jnp.zeros((1, C, 1, 1), dtype=jnp.float32)

    y, new_mm, new_mv = batch_norm_forward(x, gamma, beta, moving_mean, moving_var)
    jax.block_until_ready((y, new_mm, new_mv))

    # Sanity check against the pure-JAX reference.
    y_ref, mm_ref, mv_ref = _reference(x, gamma, beta, moving_mean, moving_var)
    assert jnp.allclose(y, y_ref, atol=1e-4, rtol=1e-4)
    assert jnp.allclose(new_mm, jnp.broadcast_to(mm_ref, new_mm.shape), atol=1e-5)
    assert jnp.allclose(new_mv, jnp.broadcast_to(mv_ref, new_mv.shape), atol=1e-5)

    print("KERNEL_OK")
</pallas_src>

<mosaic_0001>
module attributes {stable_mosaic.version = 11 : i64} {
  func.func @_stats_kernel(%arg0: i32, %arg1: memref<8x256xf32, #tpu.memory_space<vmem>>, %arg2: memref<1x256xf32, #tpu.memory_space<vmem>>, %arg3: memref<1x256xf32, #tpu.memory_space<vmem>>) attributes {dimension_semantics = [#tpu.dimension_semantics<arbitrary>], iteration_bounds = array<i64: 1>, scalar_prefetch = 0 : i64, scratch_operands = 0 : i64, tpu.core_type = #tpu.core_type<tc>, window_params = [{transform_indices = @transform_0, window_bounds = array<i64: 8, 256>}, {pipeline_mode = #tpu.pipeline_mode<synchronous>, transform_indices = @transform_1, window_bounds = array<i64: 1, 256>}, {pipeline_mode = #tpu.pipeline_mode<synchronous>, transform_indices = @transform_2, window_bounds = array<i64: 1, 256>}]} {
    %c0_i32 = arith.constant 0 : i32
    %0 = arith.cmpi eq, %arg0, %c0_i32 : i32
    %1 = arith.extui %0 : i1 to i32
    %c0_i32_0 = arith.constant 0 : i32
    %2 = arith.cmpi ne, %1, %c0_i32_0 : i32
    scf.if %2 {
      %cst_11 = arith.constant 0.000000e+00 : f32
      %15 = vector.broadcast %cst_11 : f32 to vector<1x256xf32>
      %c0_12 = arith.constant 0 : index
      %c0_13 = arith.constant 0 : index
      %16 = vector.load %arg2[%c0_12, %c0_13] : memref<1x256xf32, #tpu.memory_space<vmem>>, vector<1x256xf32>
      tpu.vector_store %arg2[%c0_12, %c0_13], %15 {strides = array<i32>} : memref<1x256xf32, #tpu.memory_space<vmem>>, vector<1x256xf32>,
      %cst_14 = arith.constant 0.000000e+00 : f32
      %17 = vector.broadcast %cst_14 : f32 to vector<1x256xf32>
      %c0_15 = arith.constant 0 : index
      %c0_16 = arith.constant 0 : index
      %18 = vector.load %arg3[%c0_15, %c0_16] : memref<1x256xf32, #tpu.memory_space<vmem>>, vector<1x256xf32>
      tpu.vector_store %arg3[%c0_15, %c0_16], %17 {strides = array<i32>} : memref<1x256xf32, #tpu.memory_space<vmem>>, vector<1x256xf32>,
    } else {
    }
    %c0 = arith.constant 0 : index
    %c0_1 = arith.constant 0 : index
    %3 = vector.load %arg1[%c0, %c0_1] : memref<8x256xf32, #tpu.memory_space<vmem>>, vector<8x256xf32>
    %c0_2 = arith.constant 0 : index
    %c0_3 = arith.constant 0 : index
    %4 = vector.load %arg2[%c0_2, %c0_3] : memref<1x256xf32, #tpu.memory_space<vmem>>, vector<1x256xf32>
    %cst = arith.constant dense<0.000000e+00> : vector<256xf32>
    %5 = vector.multi_reduction <add>, %3, %cst [0] : vector<8x256xf32> to vector<256xf32>
    %6 = vector.shape_cast %5 : vector<256xf32> to vector<1x256xf32>
    %7 = arith.addf %4, %6 : vector<1x256xf32>
    %c0_4 = arith.constant 0 : index
    %c0_5 = arith.constant 0 : index
    %8 = vector.load %arg2[%c0_4, %c0_5] : memref<1x256xf32, #tpu.memory_space<vmem>>, vector<1x256xf32>
    tpu.vector_store %arg2[%c0_4, %c0_5], %7 {strides = array<i32>} : memref<1x256xf32, #tpu.memory_space<vmem>>, vector<1x256xf32>,
    %c0_6 = arith.constant 0 : index
    %c0_7 = arith.constant 0 : index
    %9 = vector.load %arg3[%c0_6, %c0_7] : memref<1x256xf32, #tpu.memory_space<vmem>>, vector<1x256xf32>
    %10 = arith.mulf %3, %3 : vector<8x256xf32>
    %cst_8 = arith.constant dense<0.000000e+00> : vector<256xf32>
    %11 = vector.multi_reduction <add>, %10, %cst_8 [0] : vector<8x256xf32> to vector<256xf32>
    %12 = vector.shape_cast %11 : vector<256xf32> to vector<1x256xf32>
    %13 = arith.addf %9, %12 : vector<1x256xf32>
    %c0_9 = arith.constant 0 : index
    %c0_10 = arith.constant 0 : index
    %14 = vector.load %arg3[%c0_9, %c0_10] : memref<1x256xf32, #tpu.memory_space<vmem>>, vector<1x256xf32>
    tpu.vector_store %arg3[%c0_9, %c0_10], %13 {strides = array<i32>} : memref<1x256xf32, #tpu.memory_space<vmem>>, vector<1x256xf32>,
    return
  }
  func.func @transform_0(%arg0: i32) -> (i32, i32) {
    %c0_i32 = arith.constant 0 : i32
    %c0_i32_0 = arith.constant 0 : i32
    return %arg0, %c0_i32 : i32, i32
  }
  func.func @transform_1(%arg0: i32) -> (i32, i32) {
    %c0_i32 = arith.constant 0 : i32
    %c0_i32_0 = arith.constant 0 : i32
    %c0_i32_1 = arith.constant 0 : i32
    return %c0_i32, %c0_i32_0 : i32, i32
  }
  func.func @transform_2(%arg0: i32) -> (i32, i32) {
    %c0_i32 = arith.constant 0 : i32
    %c0_i32_0 = arith.constant 0 : i32
    %c0_i32_1 = arith.constant 0 : i32
    return %c0_i32, %c0_i32_0 : i32, i32
  }
}

</mosaic_0001>

<bundles_post_ra>
// kernel: tpu_custom_call.1
= control target key start
LH: loop header
LB: loop body
LE: loop exit
PB: predicated region body
PF: predicated region fallthrough
CT: control target
= control target key end

     0   :  { %8 = vsyncpa [#allocation3], 0  ;;  %s249_s0 = inlined_call_operand.hbm [shape: f32[8,256], index: 0, kind: input, shape index: {}]   ;;  %s250_s1 = inlined_call_operand.hbm [shape: f32[1,256], index: 1, kind: output, shape index: {0}]   ;;  %s251_s2 = inlined_call_operand.hbm [shape: f32[1,256], index: 2, kind: output, shape index: {1}]  }
   0x1   :  { %9 = vsyncpa [#allocation4], 0 }
   0x2   :  { %10 = vsyncpa [#allocation7], 0  ;;  %s208_s9 = smov [#allocation2]  }
   0x3   :  { %s17_s10 = sshll.u32 %s208_s9, 4  ;;  %s18_s10 = int_to_ptr.vmem [resolvable:$true] %s17_s10 }
   0x4   :  { %s150_s11 = scalar_lea.vmem %s18_s10, 256  ;;  %p155_p1 = scmp.lt.s32.totalorder %s18_s10, %s18_s10 }
   0x5   :  { %p151_p0 = scmp.ne.s32.totalorder %s18_s10, %s150_s11  ;;  %p156_p2 = scmp.lt.s32.totalorder %s150_s11, %s150_s11 }
   0x7   :  { %p157_p3 = por %p156_p2, %p155_p1 }
   0x9   :  { %p158_p4 = pnand %p157_p3, %p151_p0 }
   0xb   :  { %161 = shalt.err (!%p158_p4)
}
   0xc   :  { %20 = dma.hbm_to_vmem [thread:$0]  %s249_s0, 256, %s18_s10, [#allocation3]  }
   0xd   :  { %202 = dma.done.wait [#allocation3], 256  }
   0xe   :  { %203 = vsyncadd [#allocation3], 4294967040  ;;  %v28_v0 = vlaneseq  ;;  %v209_v2 = vmov 0.0   ;;  %v34_v3 = vld [vmem:[#allocation2] sm:$0xff]  ;;  %v35_v4 = vld [vmem:[#allocation2 + $0x8] sm:$0xff]  ;;  %s211_s0 = smov [#allocation5]  }
   0xf   :  { %v37_v5 = vrot.slane %v34_v3, 4  ;;  %v43_v6 = vrot.slane %v35_v4, 4  ;;  %v74_v7 = vmul.f32 %v34_v3, %v34_v3  ;;  %v75_v8 = vmul.f32 %v35_v4, %v35_v4  ;;  %s114_s14 = sshll.u32 %s211_s0, 4  ;;  %s212_s15 = smov [#allocation6]   ;;  %s115_s14 = int_to_ptr.vmem [resolvable:$true] %s114_s14 }
  0x10   :  { %vm231_vm0 = vcmp.lt.s32.totalorder %v28_v0, 256  ;;  %v210_v9 = vmov 1966171168   ;;  %v56_v20 = vshrl.u32 %v28_v0, 7  ;;  %s124_s16 = sshll.u32 %s212_s15, 4  ;;  %s162_s17 = scalar_lea.vmem %s115_s14, 32  ;;  %s125_s16 = int_to_ptr.vmem [resolvable:$true] %s124_s16 }
  0x11   :  { %32 = vst.msk [vmem:[#allocation5] sm:$0x3] %vm231_vm0, %v209_v2  ;;  %33 = vst.msk [vmem:[#allocation6] sm:$0x3] %vm231_vm0, %v209_v2  ;;  %v53_v10 = vunpack.c.l.s4 %v210_v9  ;;  %v38_v11 = vadd.f32 %v37_v5, %v34_v3  ;;  %v44_v12 = vadd.f32 %v43_v6, %v35_v4  ;;  %v76_v13 = vrot.slane %v74_v7, 4  ;;  %p163_p5 = scmp.ne.s32.totalorder %s115_s14, %s162_s17  ;;  %p167_p6 = scmp.lt.s32.totalorder %s115_s14, %s115_s14 }
  0x12   :  { %v82_v14 = vrot.slane %v75_v8, 4  ;;  %p168_p7 = scmp.lt.s32.totalorder %s162_s17, %s162_s17 }
  0x13   :  { %v39_v15 = vrot.slane %v38_v11, 2  ;;  %v45_v16 = vrot.slane %v44_v12, 2  ;;  %v77_v17 = vadd.f32 %v76_v13, %v74_v7  ;;  %v54_v19 = vunpack.c.0.s8 %v53_v10 }
  0x14   :  { %v83_v18 = vadd.f32 %v82_v14, %v75_v8  ;;  %p169_p8 = por %p168_p7, %p167_p6 }
  0x15   :  { %v40_v21 = vadd.f32 %v39_v15, %v38_v11  ;;  %v46_v22 = vadd.f32 %v45_v16, %v44_v12  ;;  %v78_v23 = vrot.slane %v77_v17, 2  ;;  %v57_v29 = vsub.s32 %v54_v19, %v56_v20 }
  0x16   :  { %v84_v24 = vrot.slane %v83_v18, 2  ;;  %p170_p9 = pnand %p169_p8, %p163_p5 }
  0x17   :  { %v41_v25 = vrot.slane %v40_v21, 1  ;;  %v47_v26 = vrot.slane %v46_v22, 1  ;;  %v79_v27 = vadd.f32 %v78_v23, %v77_v17 }
  0x18   :  { %v85_v28 = vadd.f32 %v84_v24, %v83_v18  ;;  %v36_v39 = vld [vmem:[#allocation5] sm:$0x3]  ;;  %v73_v42 = vld [vmem:[#allocation6] sm:$0x3] }
  0x19   :  { %v42_v30 = vadd.f32 %v41_v25, %v40_v21  ;;  %v48_v31 = vadd.f32 %v47_v26, %v46_v22  ;;  %v80_v32 = vrot.slane %v79_v27, 1 }
  0x1a   :  { %v86_v33 = vrot.slane %v85_v28, 1 }
  0x1b   :  { %v51_v34 = vcombine.low %v42_v30, %v48_v31  ;;  %v81_v35 = vadd.f32 %v80_v32, %v79_v27 }
  0x1c   :  { %v87_v36 = vadd.f32 %v86_v33, %v85_v28 }
  0x1d   :  { %v58_v37 = vrot.slane %v51_v34, %v57_v29 }
  0x1e   :  { %v90_v38 = vcombine.low %v81_v35, %v87_v36 }
  0x1f   :  { %v65_v40 = vrot.slane %v58_v37, %v57_v29 }
  0x20   :  { %v97_v41 = vrot.slane %v90_v38, %v57_v29 }
  0x21   :  { %v67_v43 = vadd.f32 %v65_v40, %v36_v39 }
  0x22   :  { %v104_v44 = vrot.slane %v97_v41, %v57_v29 }
  0x23   :  { %72 = vst.msk [vmem:[#allocation5] sm:$0x3] %vm231_vm0, %v67_v43 }
  0x24   :  { %v106_v45 = vadd.f32 %v104_v44, %v73_v42 }
  0x25   :  { %173 = shalt.err (!%p170_p9)
}
  0x26   :  { %117 = dma.vmem_to_hbm [thread:$0]  %s115_s14, 32, %s250_s1, [#allocation4]   ;;  %107 = vst.msk [vmem:[#allocation6] sm:$0x3] %vm231_vm0, %v106_v45 }
  0x27   :  { %s182_s20 = scalar_lea.vmem %s125_s16, 32  ;;  %p187_p11 = scmp.lt.s32.totalorder %s125_s16, %s125_s16 }
  0x28   :  { %p183_p10 = scmp.ne.s32.totalorder %s125_s16, %s182_s20  ;;  %p188_p12 = scmp.lt.s32.totalorder %s182_s20, %s182_s20 }
  0x2a   :  { %p189_p13 = por %p188_p12, %p187_p11 }
  0x2c   :  { %p190_p0 = pnand %p189_p13, %p183_p10 }
  0x2e   :  { %193 = shalt.err (!%p190_p0)
}
  0x2f   :  { %127 = dma.vmem_to_hbm [thread:$0]  %s125_s16, 32, %s251_s2, [#allocation7]  }
  0x30   :  { %204 = dma.done.wait [#allocation4], 32  }
  0x31   :  { %205 = vsyncadd [#allocation4], 4294967264 }
  0x32   :  { %206 = dma.done.wait [#allocation7], 32  }
  0x33   :  { %207 = vsyncadd [#allocation7], 4294967264 }
  0x34   :  { %134 = vsyncpa [#allocation3], 1 }
  0x35   :  { %135 = vsyncpa [#allocation4], 1 }
  0x36   :  { %136 = vsyncpa [#allocation7], 1 }

</bundles_post_ra>
